<compile_context>
chip_gen: v7x
topology: tpu7x:2x2x1
jax: 0.10.0
libtpu: 0.0.40
codegen_flags: <defaults>
</compile_context>

<pallas_src>
from functools import partial

import jax
import jax.numpy as jnp
import numpy as np
from jax.experimental import pallas as pl
from jax.experimental.pallas import tpu as pltpu

LANE = 128
SUBLANE = 8
MIN_TB = 256  # don't shrink the batch tile below this (per-step overhead / MXU)


def _round_up(x, m):
    return ((x + m - 1) // m) * m


def dqn_kernel(x_ref, w1_ref, b1_ref, w2_ref, b2_ref, w3_ref, b3_ref, o_ref):
    n_act = o_ref.shape[1]

    # ---- Layer 1: tiny contraction (K = n_obs_pad) -> one f32 MXU pass.
    h1 = jnp.dot(x_ref[...], w1_ref[...], preferred_element_type=jnp.float32)
    h1 = jnp.maximum(h1 + b1_ref[...], 0.0)             # f32 bias + ReLU (VPU)

    # ---- Layer 2: bf16 operands on the MXU, f32 accumulation.
    h2 = jnp.dot(h1.astype(jnp.bfloat16), w2_ref[...],
                 preferred_element_type=jnp.float32)     # [TB, H]
    h2 = jnp.maximum(h2 + b2_ref[...], 0.0)              # f32 bias + ReLU (VPU)

    # ---- Layer 3: lane-padded bf16 MXU matmul; slice to the true action
    #      width before the store so only n_actions columns hit HBM.
    out = jnp.dot(h2.astype(jnp.bfloat16), w3_ref[...],
                  preferred_element_type=jnp.float32)    # [TB, A_pad]
    o_ref[...] = (out[:, :n_act] + b3_ref[...]).astype(o_ref.dtype)


def prepare_params(params):
    """One-time weight prep (hoisted out of the per-call hot path).

    Returns (w1_pad f32, b1 f32, w2 bf16, b2 f32, w3_pad bf16, b3 f32) with
    w1 sublane-padded on its K dim and w3 lane-padded to a multiple of 128.
    """
    w1, b1, w2, b2, w3, b3 = params
    n_obs, H = w1.shape
    A = w3.shape[1]

    n_obs_pad = _round_up(n_obs, SUBLANE)
    A_pad = _round_up(max(A, LANE), LANE)

    w1_pad = jnp.zeros((n_obs_pad, H), jnp.float32).at[:n_obs].set(
        w1.astype(jnp.float32))
    w3_pad = jnp.zeros((H, A_pad), jnp.bfloat16).at[:, :A].set(
        w3.astype(jnp.bfloat16))

    return (w1_pad,
            b1.reshape(1, H).astype(jnp.float32),
            w2.astype(jnp.bfloat16),
            b2.reshape(1, H).astype(jnp.float32),
            w3_pad,
            b3.reshape(1, A).astype(jnp.float32))


@partial(jax.jit, static_argnames=("tb",))
def dqn_forward(obs, prepped, *, tb=2048):
    """obs: [B, n_obs] f32.  prepped: output of prepare_params()."""
    w1, b1, w2_bf, b2, w3_bf, b3 = prepped
    B, n_obs = obs.shape
    n_obs_pad, H = w1.shape
    A_pad = w3_bf.shape[1]
    A = b3.shape[1]

    # --- Batch tiling: big tiles, minimal last-tile padding, and (when the
    #     batch is big enough) an even number of grid steps so the "parallel"
    #     batch axis can use both TensorCores on v7x.
    if B < 2 * MIN_TB:
        n_steps = 1
    else:
        n_steps = max(2, pl.cdiv(B, tb))
        if n_steps % 2:
            n_steps += 1
    TB = min(tb, _round_up(pl.cdiv(B, n_steps), SUBLANE))
    B_pad = TB * n_steps

    # Single fused pad for both the row padding and the K (n_obs) padding.
    if (B_pad, n_obs_pad) != obs.shape:
        obs = jnp.zeros((B_pad, n_obs_pad), obs.dtype).at[:B, :n_obs].set(obs)

    out = pl.pallas_call(
        dqn_kernel,
        out_shape=jax.ShapeDtypeStruct((B_pad, A), jnp.float32),
        grid=(n_steps,),
        in_specs=[
            pl.BlockSpec((TB, n_obs_pad), lambda i: (i, 0)),   # obs (pipelined)
            pl.BlockSpec((n_obs_pad, H), lambda i: (0, 0)),    # w1 (VMEM-resident)
            pl.BlockSpec((1, H), lambda i: (0, 0)),            # b1
            pl.BlockSpec((H, H), lambda i: (0, 0)),            # w2 (bf16)
            pl.BlockSpec((1, H), lambda i: (0, 0)),            # b2
            pl.BlockSpec((H, A_pad), lambda i: (0, 0)),        # w3 (bf16, lane-padded)
            pl.BlockSpec((1, A), lambda i: (0, 0)),            # b3 (true width)
        ],
        out_specs=pl.BlockSpec((TB, A), lambda i: (i, 0)),     # true-width output
        compiler_params=pltpu.CompilerParams(
            dimension_semantics=("parallel",),
            vmem_limit_bytes=32 * 1024 * 1024),
    )(obs, w1, b1, w2_bf, b2, w3_bf, b3)

    return out[:B]


def init_params(key, n_observations, n_actions, n_hidden=128):
    # Deterministic init mimicking PyTorch Linear (uniform +/- 1/sqrt(fan_in)).
    ks = jax.random.split(key, 6)

    def linear(kw, kb, fan_in, fan_out):
        bound = 1.0 / np.sqrt(fan_in)
        w = jax.random.uniform(kw, (fan_in, fan_out), jnp.float32, -bound, bound)
        b = jax.random.uniform(kb, (1, fan_out), jnp.float32, -bound, bound)
        return w, b

    w1, b1 = linear(ks[0], ks[1], n_observations, n_hidden)
    w2, b2 = linear(ks[2], ks[3], n_hidden, n_hidden)
    w3, b3 = linear(ks[4], ks[5], n_hidden, n_actions)
    return (w1, b1, w2, b2, w3, b3)


def dqn_reference(obs, params):
    # Pure-f32 reference (kernel uses bf16 MXU operands -> loose tolerance).
    w1, b1, w2, b2, w3, b3 = params
    h1 = jnp.maximum(obs @ w1 + b1, 0.0)
    h2 = jnp.maximum(h1 @ w2 + b2, 0.0)
    return h2 @ w3 + b3


if __name__ == "__main__":
    key = jax.random.PRNGKey(0)
    k_obs, k_obs2, k_params = jax.random.split(key, 3)

    n_observations, n_actions, n_hidden = 4, 2, 128
    params = init_params(k_params, n_observations, n_actions, n_hidden)
    prepped = jax.block_until_ready(prepare_params(params))   # one-time prep

    # Small batch (typical per-step inference / latency path): single tile.
    obs_small = jax.random.normal(k_obs, (8, n_observations), jnp.float32)
    out_small = jax.block_until_ready(dqn_forward(obs_small, prepped))
    np.testing.assert_allclose(np.asarray(out_small),
                               np.asarray(dqn_reference(obs_small, params)),
                               rtol=2e-2, atol=2e-2)

    # Larger ragged batch: exercises the 2-step grid (304-row tiles, 608 pad).
    obs_big = jax.random.normal(k_obs2, (600, n_observations), jnp.float32)
    out_big = jax.block_until_ready(dqn_forward(obs_big, prepped))
    np.testing.assert_allclose(np.asarray(out_big),
                               np.asarray(dqn_reference(obs_big, params)),
                               rtol=2e-2, atol=2e-2)

    print("KERNEL_OK")
</pallas_src>

<mosaic_0001>
module attributes {stable_mosaic.version = 11 : i64} {
  func.func @dqn_kernel(%arg0: i32, %arg1: memref<8x8xf32, #tpu.memory_space<vmem>>, %arg2: memref<8x128xf32, #tpu.memory_space<vmem>>, %arg3: memref<1x128xf32, #tpu.memory_space<vmem>>, %arg4: memref<128x128xbf16, #tpu.memory_space<vmem>>, %arg5: memref<1x128xf32, #tpu.memory_space<vmem>>, %arg6: memref<128x128xbf16, #tpu.memory_space<vmem>>, %arg7: memref<1x2xf32, #tpu.memory_space<vmem>>, %arg8: memref<8x2xf32, #tpu.memory_space<vmem>>) attributes {dimension_semantics = [#tpu.dimension_semantics<parallel>], iteration_bounds = array<i64: 1>, scalar_prefetch = 0 : i64, scratch_operands = 0 : i64, tpu.core_type = #tpu.core_type<tc>, window_params = [{transform_indices = @transform_0, window_bounds = array<i64: 8, 8>}, {pipeline_mode = #tpu.pipeline_mode<synchronous>, transform_indices = @transform_1, window_bounds = array<i64: 8, 128>}, {pipeline_mode = #tpu.pipeline_mode<synchronous>, transform_indices = @transform_2, window_bounds = array<i64: 1, 128>}, {pipeline_mode = #tpu.pipeline_mode<synchronous>, transform_indices = @transform_3, window_bounds = array<i64: 128, 128>}, {pipeline_mode = #tpu.pipeline_mode<synchronous>, transform_indices = @transform_4, window_bounds = array<i64: 1, 128>}, {pipeline_mode = #tpu.pipeline_mode<synchronous>, transform_indices = @transform_5, window_bounds = array<i64: 128, 128>}, {pipeline_mode = #tpu.pipeline_mode<synchronous>, transform_indices = @transform_6, window_bounds = array<i64: 1, 2>}, {transform_indices = @transform_7, window_bounds = array<i64: 8, 2>}]} {
    %c0 = arith.constant 0 : index
    %c0_0 = arith.constant 0 : index
    %0 = vector.load %arg1[%c0, %c0_0] : memref<8x8xf32, #tpu.memory_space<vmem>>, vector<8x8xf32>
    %c0_1 = arith.constant 0 : index
    %c0_2 = arith.constant 0 : index
    %1 = vector.load %arg2[%c0_1, %c0_2] : memref<8x128xf32, #tpu.memory_space<vmem>>, vector<8x128xf32>
    %cst = arith.constant dense<0.000000e+00> : vector<8x128xf32>
    %2 = tpu.matmul %0, %1, %cst {dimension_numbers = #tpu.dot_dimension_numbers<[1], [0], [0], [1], [0, 0, 1, 1], [], []>} : vector<8x8xf32>, vector<8x128xf32>, vector<8x128xf32> -> vector<8x128xf32>
    %c0_3 = arith.constant 0 : index
    %c0_4 = arith.constant 0 : index
    %3 = vector.load %arg3[%c0_3, %c0_4] : memref<1x128xf32, #tpu.memory_space<vmem>>, vector<1x128xf32>
    %4 = vector.broadcast %3 : vector<1x128xf32> to vector<8x128xf32>
    %5 = arith.addf %2, %4 : vector<8x128xf32>
    %cst_5 = arith.constant 0.000000e+00 : f32
    %6 = vector.broadcast %cst_5 : f32 to vector<8x128xf32>
    %7 = arith.maximumf %5, %6 : vector<8x128xf32>
    %8 = arith.truncf %7 : vector<8x128xf32> to vector<8x128xbf16>
    %c0_6 = arith.constant 0 : index
    %c0_7 = arith.constant 0 : index
    %9 = vector.load %arg4[%c0_6, %c0_7] : memref<128x128xbf16, #tpu.memory_space<vmem>>, vector<128x128xbf16>
    %cst_8 = arith.constant dense<0.000000e+00> : vector<8x128xf32>
    %10 = tpu.matmul %8, %9, %cst_8 {dimension_numbers = #tpu.dot_dimension_numbers<[1], [0], [0], [1], [0, 0, 1, 1], [], []>} : vector<8x128xbf16>, vector<128x128xbf16>, vector<8x128xf32> -> vector<8x128xf32>
    %c0_9 = arith.constant 0 : index
    %c0_10 = arith.constant 0 : index
    %11 = vector.load %arg5[%c0_9, %c0_10] : memref<1x128xf32, #tpu.memory_space<vmem>>, vector<1x128xf32>
    %12 = vector.broadcast %11 : vector<1x128xf32> to vector<8x128xf32>
    %13 = arith.addf %10, %12 : vector<8x128xf32>
    %cst_11 = arith.constant 0.000000e+00 : f32
    %14 = vector.broadcast %cst_11 : f32 to vector<8x128xf32>
    %15 = arith.maximumf %13, %14 : vector<8x128xf32>
    %16 = arith.truncf %15 : vector<8x128xf32> to vector<8x128xbf16>
    %c0_12 = arith.constant 0 : index
    %c0_13 = arith.constant 0 : index
    %17 = vector.load %arg6[%c0_12, %c0_13] : memref<128x128xbf16, #tpu.memory_space<vmem>>, vector<128x128xbf16>
    %cst_14 = arith.constant dense<0.000000e+00> : vector<8x128xf32>
    %18 = tpu.matmul %16, %17, %cst_14 {dimension_numbers = #tpu.dot_dimension_numbers<[1], [0], [0], [1], [0, 0, 1, 1], [], []>} : vector<8x128xbf16>, vector<128x128xbf16>, vector<8x128xf32> -> vector<8x128xf32>
    %19 = vector.extract_strided_slice %18 {offsets = [0, 0], sizes = [8, 2], strides = [1, 1]} : vector<8x128xf32> to vector<8x2xf32>
    %c0_15 = arith.constant 0 : index
    %c0_16 = arith.constant 0 : index
    %20 = vector.load %arg7[%c0_15, %c0_16] : memref<1x2xf32, #tpu.memory_space<vmem>>, vector<1x2xf32>
    %21 = vector.broadcast %20 : vector<1x2xf32> to vector<8x2xf32>
    %22 = arith.addf %19, %21 : vector<8x2xf32>
    %c0_17 = arith.constant 0 : index
    %c0_18 = arith.constant 0 : index
    %23 = vector.load %arg8[%c0_17, %c0_18] : memref<8x2xf32, #tpu.memory_space<vmem>>, vector<8x2xf32>
    tpu.vector_store %arg8[%c0_17, %c0_18], %22 {strides = array<i32>} : memref<8x2xf32, #tpu.memory_space<vmem>>, vector<8x2xf32>,
    return
  }
  func.func @transform_0(%arg0: i32) -> (i32, i32) {
    %c0_i32 = arith.constant 0 : i32
    %c0_i32_0 = arith.constant 0 : i32
    return %arg0, %c0_i32 : i32, i32
  }
  func.func @transform_1(%arg0: i32) -> (i32, i32) {
    %c0_i32 = arith.constant 0 : i32
    %c0_i32_0 = arith.constant 0 : i32
    %c0_i32_1 = arith.constant 0 : i32
    return %c0_i32, %c0_i32_0 : i32, i32
  }
  func.func @transform_2(%arg0: i32) -> (i32, i32) {
    %c0_i32 = arith.constant 0 : i32
    %c0_i32_0 = arith.constant 0 : i32
    %c0_i32_1 = arith.constant 0 : i32
    return %c0_i32, %c0_i32_0 : i32, i32
  }
  func.func @transform_3(%arg0: i32) -> (i32, i32) {
    %c0_i32 = arith.constant 0 : i32
    %c0_i32_0 = arith.constant 0 : i32
    %c0_i32_1 = arith.constant 0 : i32
    return %c0_i32, %c0_i32_0 : i32, i32
  }
  func.func @transform_4(%arg0: i32) -> (i32, i32) {
    %c0_i32 = arith.constant 0 : i32
    %c0_i32_0 = arith.constant 0 : i32
    %c0_i32_1 = arith.constant 0 : i32
    return %c0_i32, %c0_i32_0 : i32, i32
  }
  func.func @transform_5(%arg0: i32) -> (i32, i32) {
    %c0_i32 = arith.constant 0 : i32
    %c0_i32_0 = arith.constant 0 : i32
    %c0_i32_1 = arith.constant 0 : i32
    return %c0_i32, %c0_i32_0 : i32, i32
  }
  func.func @transform_6(%arg0: i32) -> (i32, i32) {
    %c0_i32 = arith.constant 0 : i32
    %c0_i32_0 = arith.constant 0 : i32
    %c0_i32_1 = arith.constant 0 : i32
    return %c0_i32, %c0_i32_0 : i32, i32
  }
  func.func @transform_7(%arg0: i32) -> (i32, i32) {
    %c0_i32 = arith.constant 0 : i32
    %c0_i32_0 = arith.constant 0 : i32
    return %arg0, %c0_i32 : i32, i32
  }
}

</mosaic_0001>

<bundles_post_ra>
// kernel: dqn_forward.1
= control target key start
LH: loop header
LB: loop body
LE: loop exit
PB: predicated region body
PF: predicated region fallthrough
CT: control target
= control target key end

     0   :  { %12 = vsyncpa [#allocation3], 0  ;;  %s642_s0 = inlined_call_operand.vmem [shape: f32[8,8], index: 0, kind: input, shape index: {}]   ;;  %s643_s1 = inlined_call_operand.hbm [shape: f32[8,128], index: 1, kind: input, shape index: {}]   ;;  %s644_s2 = inlined_call_operand.vmem [shape: f32[1,128], index: 2, kind: input, shape index: {}]   ;;  %s645_s3 = inlined_call_operand.hbm [shape: bf16[128,128], index: 3, kind: input, shape index: {}]   ;;  %s646_s4 = inlined_call_operand.vmem [shape: f32[1,128], index: 4, kind: input, shape index: {}]   ;;  %s647_s5 = inlined_call_operand.vmem [shape: bf16[128,128], index: 5, kind: input, shape index: {}]   ;;  %s648_s6 = inlined_call_operand.vmem [shape: f32[1,2], index: 6, kind: input, shape index: {}]   ;;  %s649_s7 = inlined_call_operand.vmem [shape: f32[8,2], index: 7, kind: output, shape index: {}]  }
   0x1   :  { %13 = vsyncpa [#allocation5], 0  ;;  %s526_s24 = smov [#allocation2]   ;;  %s527_s26 = smov [#allocation4]  }
   0x2   :  { %s22_s25 = sshll.u32 %s526_s24, 4  ;;  %s33_s27 = sshll.u32 %s527_s26, 4  ;;  %s23_s25 = int_to_ptr.vmem [resolvable:$true] %s22_s25  ;;  %s572_s27 = int_to_ptr.vmem [resolvable:$true] %s33_s27 }
   0x3   :  { %s478_s30 = scalar_lea.hbm %s643_s1, 128 }
   0x4   :  { %p479_p0 = scmp.ne.s32.totalorder %s643_s1, %s478_s30  ;;  %p482_p1 = scmp.lt.u32.totalorder %s478_s30, %s643_s1 }
   0x6   :  { %p484_p2 = pnand %p482_p1, %p479_p0 }
   0x8   :  { %487 = shalt.err (!%p484_p2)
}
   0x9   :  { %s488_s12 = scalar_lea.vmem %s23_s25, 128  ;;  %p493_p4 = scmp.lt.s32.totalorder %s23_s25, %s23_s25 }
   0xa   :  { %p489_p3 = scmp.ne.s32.totalorder %s23_s25, %s488_s12  ;;  %p494_p5 = scmp.lt.s32.totalorder %s488_s12, %s488_s12 }
   0xc   :  { %p495_p6 = por %p494_p5, %p493_p4 }
   0xe   :  { %p496_p7 = pnand %p495_p6, %p489_p3 }
  0x10   :  { %499 = shalt.err (!%p496_p7)
}
  0x11   :  { %25 = dma.hbm_to_vmem [thread:$0]  %s643_s1, 128, %s23_s25, [#allocation3]  }
  0x12   :  { %s500_s17 = scalar_lea.hbm %s645_s3, 1024 }
  0x13   :  { %p501_p8 = scmp.ne.s32.totalorder %s645_s3, %s500_s17  ;;  %p504_p9 = scmp.lt.u32.totalorder %s500_s17, %s645_s3 }
  0x15   :  { %p506_p10 = pnand %p504_p9, %p501_p8 }
  0x17   :  { %509 = shalt.err (!%p506_p10)
}
  0x18   :  { %s510_s22 = scalar_lea.vmem %s572_s27, 1024  ;;  %p515_p12 = scmp.lt.s32.totalorder %s572_s27, %s572_s27 }
  0x19   :  { %p511_p11 = scmp.ne.s32.totalorder %s572_s27, %s510_s22  ;;  %p516_p13 = scmp.lt.s32.totalorder %s510_s22, %s510_s22 }
  0x1b   :  { %p517_p0 = por %p516_p13, %p515_p12 }
  0x1d   :  { %p518_p1 = pnand %p517_p0, %p511_p11 }
  0x1f   :  { %521 = shalt.err (!%p518_p1)
}
  0x20   :  { %s528_s1 = smov 64   ;;  %s529_s23 = smov 4  }
  0x21   :  { %39 = dma.hbm_to_vmem [thread:$0]  %s645_s3, 1024, %s572_s27, [#allocation5], %s528_s1, %s528_s1, %s529_s23  }
  0x22   :  { %522 = dma.done.wait [#allocation3], 128  }
  0x23   :  { %523 = vsyncadd [#allocation3], 4294967168 }
  0x24   :  { %524 = dma.done.wait [#allocation5], 1024  }
  0x25   :  { %525 = vsyncadd [#allocation5], 4294966272  ;;  %v530_v0 = vmov 0.0   ;;  %vm531_vm0 = vmmov 0   ;;  %vm62_vm1 = vcmask 64512   ;;  %v54_v1 = vld [vmem:[#allocation2] sm:$0xff] }
  0x26   :  { %411 = vmatprep.subr.mxu0 %v530_v0  ;;  %413 = vmatprep.mubr.msk.f32.mxu0 %vm531_vm0, %v530_v0  ;;  %v53_v2 = vld [vmem:[%s642_s0] sm:$0xff]  ;;  %v462_v3 = vld [vmem:[#allocation4] sm:$0xff]   ;;  %v463_v4 = vld [vmem:[#allocation4 + $0x8] sm:$0xff]   ;;  %vm363_vm2 = vcmask 15360  }
  0x27   :  { %416 = vmatprep.subr.bf16.mxu1 %v530_v0  ;;  %432 = vmatprep.mubr.msk.bf16.mxu1 %vm531_vm0, %v530_v0  ;;  %v464_v5 = vld [vmem:[#allocation4 + $0x10] sm:$0xff]   ;;  %v465_v6 = vld [vmem:[#allocation4 + $0x18] sm:$0xff]   ;;  %v466_v7 = vld [vmem:[#allocation4 + $0x20] sm:$0xff]  }
  0x28   :  { %412 = vmatpush3.msra.mxu0 %v54_v1  ;;  %417 = vmatpush3.bf16.msra.mxu1 %v462_v3  ;;  %v467_v8 = vld [vmem:[#allocation4 + $0x28] sm:$0xff]   ;;  %v468_v9 = vld [vmem:[#allocation4 + $0x30] sm:$0xff]   ;;  %v469_v10 = vld [vmem:[#allocation4 + $0x38] sm:$0xff]  }
  0x29   :  { %414 = vmatmul.mubr.msk.f32.vlgmr.msra.gmra.mrb[0].mxu0 %vm62_vm1, %v53_v2  ;;  %436 = vmatprep.subr.bf16.mxu0 %v530_v0  ;;  %v470_v11 = vld [vmem:[%s647_s5] sm:$0xff]   ;;  %v471_v12 = vld [vmem:[%s647_s5 + $0x8] sm:$0xff]   ;;  %v472_v13 = vld [vmem:[%s647_s5 + $0x10] sm:$0xff]  }
  0x2a   :  { %452 = vmatprep.mubr.msk.bf16.mxu0 %vm531_vm0, %v530_v0  ;;  %418 = vmatprep.subr.bf16.mxu1 %v530_v0  ;;  %v473_v14 = vld [vmem:[%s647_s5 + $0x18] sm:$0xff]   ;;  %v474_v15 = vld [vmem:[%s647_s5 + $0x20] sm:$0xff]   ;;  %v475_v16 = vld [vmem:[%s647_s5 + $0x28] sm:$0xff]  }
  0x2b   :  { %437 = vmatpush3.bf16.msra.mxu0 %v470_v11  ;;  %v371_v17 = vld [vmem:[%s644_s2] ss:$0 sm:$0xff]  ;;  %v476_v23 = vld [vmem:[%s647_s5 + $0x30] sm:$0xff]   ;;  %v477_v24 = vld [vmem:[%s647_s5 + $0x38] sm:$0xff]  }
  0x2c   :  { %419 = vmatpush3.bf16.msra.mxu1 %v463_v4  ;;  %438 = vmatprep.subr.bf16.mxu0 %v530_v0  ;;  %v373_v25 = vld [vmem:[%s646_s4] ss:$0 sm:$0xff] }
  0x2d   :  { %420 = vmatprep.subr.bf16.mxu1 %v530_v0  ;;  %v390_v33 = vld [vmem:[%s648_s6] ss:$0 sm:$0xff] }
  0x2f   :  { %439 = vmatpush3.bf16.msra.mxu0 %v471_v12 }
  0x30   :  { %421 = vmatpush3.bf16.msra.mxu1 %v464_v5  ;;  %440 = vmatprep.subr.bf16.mxu0 %v530_v0 }
  0x31   :  { %422 = vmatprep.subr.bf16.mxu1 %v530_v0 }
  0x33   :  { %441 = vmatpush3.bf16.msra.mxu0 %v472_v13 }
  0x34   :  { %423 = vmatpush3.bf16.msra.mxu1 %v465_v6  ;;  %442 = vmatprep.subr.bf16.mxu0 %v530_v0 }
  0x35   :  { %424 = vmatprep.subr.bf16.mxu1 %v530_v0 }
  0x37   :  { %443 = vmatpush3.bf16.msra.mxu0 %v473_v14 }
  0x38   :  { %425 = vmatpush3.bf16.msra.mxu1 %v466_v7  ;;  %444 = vmatprep.subr.bf16.mxu0 %v530_v0 }
  0x39   :  { %426 = vmatprep.subr.bf16.mxu1 %v530_v0 }
  0x3b   :  { %445 = vmatpush3.bf16.msra.mxu0 %v474_v15 }
  0x3c   :  { %427 = vmatpush3.bf16.msra.mxu1 %v467_v8  ;;  %446 = vmatprep.subr.bf16.mxu0 %v530_v0 }
  0x3d   :  { %428 = vmatprep.subr.bf16.mxu1 %v530_v0 }
  0x3f   :  { %447 = vmatpush3.bf16.msra.mxu0 %v475_v16 }
  0x40   :  { %429 = vmatpush3.bf16.msra.mxu1 %v468_v9  ;;  %448 = vmatprep.subr.bf16.mxu0 %v530_v0 }
  0x41   :  { %430 = vmatprep.subr.bf16.mxu1 %v530_v0 }
  0x43   :  { %449 = vmatpush3.bf16.msra.mxu0 %v476_v23 }
  0x44   :  { %431 = vmatpush3.bf16.msra.mxu1 %v469_v10  ;;  %450 = vmatprep.subr.bf16.mxu0 %v530_v0 }
  0x47   :  { %451 = vmatpush3.bf16.msra.mxu0 %v477_v24 }
  0xfc   :  { %v132_v18 = vpop.f32.mrb[0].mxu0 }
  0xfd   :  { %v133_v19 = vadd.f32 %v371_v17, %v132_v18  ;;  %v415_v20 = vpop.f32.mrb[1].mxu0 }
  0xff   :  { %v136_v21 = vmax.f32 %v133_v19, 0.0 }
 0x101   :  { %v137_v22 = vpack.c.bf16 %v136_v21, %v136_v21 }
 0x103   :  { %433 = vmatmul.mubr.bf16.vlgmr.msra.gmra.mrb[0].mxu1 %v137_v22 }
 0x1d6   :  { %v243_v26 = vpop.f32.mrb[0].mxu1 }
 0x1d7   :  { %v244_v27 = vadd.f32 %v373_v25, %v243_v26  ;;  %v434_v28 = vpop.f32.mrb[1].mxu1 }
 0x1d8   :  { %v246_v29 = vpop.f32.mrb[2].mxu1 }
 0x1d9   :  { %v249_v30 = vmax.f32 %v244_v27, 0.0  ;;  %v435_v31 = vpop.f32.mrb[3].mxu1 }
 0x1db   :  { %v250_v32 = vpack.c.bf16 %v249_v30, %v249_v30 }
 0x1dd   :  { %453 = vmatmul.mubr.bf16.vlgmr.msra.gmra.mrb[4].mxu0 %v250_v32 }
 0x2b0   :  { %v349_v34 = vpop.f32.mrb[4].mxu0 }
 0x2b1   :  { %v362_v35 = vadd.f32 %v390_v33, %v349_v34  ;;  %v454_v36 = vpop.f32.mrb[5].mxu0 }
 0x2b2   :  { %v352_v37 = vpop.f32.mrb[6].mxu0 }
 0x2b3   :  { %364 = vst.msk [vmem:[%s649_s7] sm:$0xff] %vm363_vm2, %v362_v35  ;;  %v455_v38 = vpop.f32.mrb[7].mxu0 }
 0x2b4   :  { %369 = vsyncpa [#allocation3], 1 }
 0x2b5   :  { %370 = vsyncpa [#allocation5], 1 }

</bundles_post_ra>
